<compile_context>
chip_gen: v7x
topology: tpu7x:2x2x1
jax: 0.10.0
libtpu: 0.0.40
codegen_flags: <defaults>
</compile_context>

<pallas_src>
import jax
import jax.numpy as jnp
from jax.experimental import pallas as pl
from jax.experimental.pallas import tpu as pltpu


# ---------------------------------------------------------------------------
# Pass 1: tiled stats kernel.  Block = (1, tc, T*V); grid = (N, C // tc).
# Reduction over the C axis (grid axis 1, 'arbitrary') into resident output
# blocks of shape (1, 1, T*V) (P3 accumulator pattern).
# ---------------------------------------------------------------------------
def _stats_kernel(x_ref, sum_ref, abs_ref, max_ref):
    k = pl.program_id(1)
    xb = x_ref[...].astype(jnp.float32)                  # (1, tc, T*V)
    s = jnp.sum(xb, axis=1, keepdims=True)               # (1, 1, T*V)
    sa = jnp.sum(jnp.abs(xb), axis=1, keepdims=True)
    mx = jnp.max(xb, axis=1, keepdims=True)

    @pl.when(k == 0)
    def _():
        sum_ref[...] = s
        abs_ref[...] = sa
        max_ref[...] = mx

    @pl.when(k > 0)
    def _():
        sum_ref[...] = sum_ref[...] + s
        abs_ref[...] = abs_ref[...] + sa
        max_ref[...] = jnp.maximum(max_ref[...], mx)


# ---------------------------------------------------------------------------
# Pass 2: tiled apply kernel.  out = x * mask_tiled  (mask pre-scaled by the
# global rescale factor).  Pure elementwise, both grid axes 'parallel'.
# ---------------------------------------------------------------------------
def _apply_kernel(x_ref, m_ref, o_ref):
    o_ref[...] = x_ref[...] * m_ref[...]                 # (1,tc,TV) * (1,1,TV)


def _choose_c_tile(c, tv, dtype_bytes=4, budget_bytes=2 * 1024 * 1024):
    """Pick a tile over C that divides C, respects the (8,128) rule and a VMEM budget."""
    lanes = ((tv + 127) // 128) * 128                    # lane-padded row width
    max_rows = max(1, budget_bytes // (lanes * dtype_bytes))
    if c <= max_rows:
        return c                                         # full dim: always legal
    t = (max_rows // 8) * 8
    while t >= 8:
        if c % t == 0:
            return t                                     # multiple of 8, divides C
        t -= 8
    return c                                             # fallback: whole C (legal)


def dropblock_ske(x, keep_prob, A, params, u, training=True):
    """JAX/Pallas equivalent of DropBlock_Ske.forward(input, keep_prob, A)."""
    if (not training) or keep_prob == 1:
        return x

    n, c, t, v = x.shape
    tv = t * v
    x_flat = x.reshape(n, c, tv)                         # lane-dense view
    tc = _choose_c_tile(c, tv)
    grid = (n, c // tc)
    cparams_stats = pltpu.CompilerParams(
        dimension_semantics=("parallel", "arbitrary"),
        vmem_limit_bytes=32 * 1024 * 1024)
    cparams_apply = pltpu.CompilerParams(
        dimension_semantics=("parallel", "parallel"),
        vmem_limit_bytes=32 * 1024 * 1024)

    # ---- Pass 1: partial stats over C, per (n, t*V+v) ----
    sum_c, abs_c, max_c = pl.pallas_call(
        _stats_kernel,
        out_shape=(jax.ShapeDtypeStruct((n, 1, tv), jnp.float32),) * 3,
        grid=grid,
        in_specs=[pl.BlockSpec((1, tc, tv), lambda i, k: (i, k, 0))],
        out_specs=(pl.BlockSpec((1, 1, tv), lambda i, k: (i, 0, 0)),) * 3,
        compiler_params=cparams_stats,
    )(x_flat)

    # ---- Middle math on tiny (N, V) data (plain JAX, off the Pallas hot path) ----
    ct = float(c * t)
    sum_ct = sum_c.reshape(n, t, v).sum(axis=1)          # sum over (c, t)
    abs_ct = abs_c.reshape(n, t, v).sum(axis=1)
    max_ct = max_c.reshape(n, t, v).max(axis=1)          # max over (c, t)
    att_mean = sum_ct / ct
    att_max = max_ct
    abs_mean = abs_ct / ct

    w1a, b1a, w1b, b1b, w2a, b2a, w2b, b2b = params
    h1 = jax.nn.relu(att_mean @ w1a.T + b1a)
    avg_out = h1 @ w1b.T + b1b
    h2 = jax.nn.relu(att_max @ w2a.T + b2a)
    max_out = h2 @ w2b.T + b2b
    att = jax.nn.sigmoid(avg_out + max_out)              # (n, v), strictly > 0

    # mean(|x * att|, axis=(c,t)) == att * mean(|x|, axis=(c,t))  since att > 0
    input_abs = att * abs_mean
    input_abs = input_abs / jnp.maximum(jnp.sum(input_abs), 1e-12) * float(n * v)

    gamma = 0.024  # hardcoded in the reference module (not derived from keep_prob)
    p = jnp.clip(input_abs * gamma, 0.0, 1.0)
    m_seed = (u < p).astype(jnp.float32)                 # Bernoulli(p) via uniforms
    M = m_seed @ A.astype(jnp.float32)
    # torch: M[M > 0.001] = 1 ; M[M < 0.5] = 0   ==>   M = (M > 0.001) ? 1 : 0
    M = jnp.where(M > 0.001, 1.0, 0.0)
    mask = 1.0 - M                                       # (n, v)
    scale = float(n * v) / jnp.maximum(jnp.sum(mask), 1.0)   # guard all-dropped case
    mask_scaled = (mask * scale).astype(x.dtype)
    # tile the 25-wide mask T times -> lane-dense (n, 1, T*V) matching x_flat layout
    mask_tiled = jnp.tile(mask_scaled, (1, t)).reshape(n, 1, tv)

    # ---- Pass 2: apply mask + rescale, lane-dense load/store, fully parallel ----
    out_flat = pl.pallas_call(
        _apply_kernel,
        out_shape=jax.ShapeDtypeStruct((n, c, tv), x.dtype),
        grid=grid,
        in_specs=[pl.BlockSpec((1, tc, tv), lambda i, j: (i, j, 0)),
                  pl.BlockSpec((1, 1, tv), lambda i, j: (i, 0, 0))],
        out_specs=pl.BlockSpec((1, tc, tv), lambda i, j: (i, j, 0)),
        compiler_params=cparams_apply,
    )(x_flat, mask_tiled)

    return out_flat.reshape(n, c, t, v)


def _init_linear(key, fan_in=25, fan_out=25):
    # deterministic stand-in for nn.Linear default init (uniform +- 1/sqrt(fan_in))
    kw, kb = jax.random.split(key)
    bound = 1.0 / (fan_in ** 0.5)
    w = jax.random.uniform(kw, (fan_out, fan_in), jnp.float32, -bound, bound)
    b = jax.random.uniform(kb, (fan_out,), jnp.float32, -bound, bound)
    return w, b


if __name__ == "__main__":
    key = jax.random.PRNGKey(0)
    n, c, t, v = 2, 4, 16, 25  # num_point = 25 (required by the 25->25 Linear layers)
    ks = jax.random.split(key, 8)

    x = jax.random.normal(ks[0], (n, c, t, v), jnp.float32)
    # synthetic symmetric-ish adjacency with self loops
    A = (jax.random.uniform(ks[1], (v, v), jnp.float32) > 0.7).astype(jnp.float32)
    A = jnp.maximum(A, jnp.eye(v, dtype=jnp.float32))

    w1a, b1a = _init_linear(ks[2])
    w1b, b1b = _init_linear(ks[3])
    w2a, b2a = _init_linear(ks[4])
    w2b, b2b = _init_linear(ks[5])
    params = (w1a, b1a, w1b, b1b, w2a, b2a, w2b, b2b)

    # uniform noise for the Bernoulli draw (deterministic)
    u = jax.random.uniform(ks[6], (n, v), jnp.float32)

    out = dropblock_ske(x, keep_prob=0.9, A=A, params=params, u=u, training=True)
    jax.block_until_ready(out)
    assert out.shape == x.shape and out.dtype == x.dtype
    assert bool(jnp.all(jnp.isfinite(out)))
    print("KERNEL_OK")
</pallas_src>

<mosaic_0001>
module attributes {stable_mosaic.version = 11 : i64} {
  func.func @_stats_kernel(%arg0: i32, %arg1: i32, %arg2: memref<1x4x400xf32, #tpu.memory_space<vmem>>, %arg3: memref<1x1x400xf32, #tpu.memory_space<vmem>>, %arg4: memref<1x1x400xf32, #tpu.memory_space<vmem>>, %arg5: memref<1x1x400xf32, #tpu.memory_space<vmem>>) attributes {dimension_semantics = [#tpu.dimension_semantics<parallel>, #tpu.dimension_semantics<arbitrary>], iteration_bounds = array<i64: 2, 1>, scalar_prefetch = 0 : i64, scratch_operands = 0 : i64, tpu.core_type = #tpu.core_type<tc>, window_params = [{transform_indices = @transform_0, window_bounds = array<i64: 1, 4, 400>}, {transform_indices = @transform_1, window_bounds = array<i64: 1, 1, 400>}, {transform_indices = @transform_2, window_bounds = array<i64: 1, 1, 400>}, {transform_indices = @transform_3, window_bounds = array<i64: 1, 1, 400>}]} {
    %c0 = arith.constant 0 : index
    %c0_0 = arith.constant 0 : index
    %c0_1 = arith.constant 0 : index
    %0 = vector.load %arg2[%c0, %c0_0, %c0_1] : memref<1x4x400xf32, #tpu.memory_space<vmem>>, vector<1x4x400xf32>
    %cst = arith.constant dense<0.000000e+00> : vector<1x400xf32>
    %1 = vector.multi_reduction <add>, %0, %cst [1] : vector<1x4x400xf32> to vector<1x400xf32>
    %2 = vector.shape_cast %1 : vector<1x400xf32> to vector<1x1x400xf32>
    %3 = math.absf %0 : vector<1x4x400xf32>
    %cst_2 = arith.constant dense<0.000000e+00> : vector<1x400xf32>
    %4 = vector.multi_reduction <add>, %3, %cst_2 [1] : vector<1x4x400xf32> to vector<1x400xf32>
    %5 = vector.shape_cast %4 : vector<1x400xf32> to vector<1x1x400xf32>
    %cst_3 = arith.constant dense<0xFF800000> : vector<1x400xf32>
    %6 = vector.multi_reduction <maximumf>, %0, %cst_3 [1] : vector<1x4x400xf32> to vector<1x400xf32>
    %7 = vector.shape_cast %6 : vector<1x400xf32> to vector<1x1x400xf32>
    %c0_i32 = arith.constant 0 : i32
    %8 = arith.cmpi eq, %arg1, %c0_i32 : i32
    %9 = arith.extui %8 : i1 to i32
    %c0_i32_4 = arith.constant 0 : i32
    %10 = arith.cmpi ne, %9, %c0_i32_4 : i32
    scf.if %10 {
      %c0_7 = arith.constant 0 : index
      %c0_8 = arith.constant 0 : index
      %c0_9 = arith.constant 0 : index
      %14 = vector.load %arg3[%c0_7, %c0_8, %c0_9] : memref<1x1x400xf32, #tpu.memory_space<vmem>>, vector<1x1x400xf32>
      tpu.vector_store %arg3[%c0_7, %c0_8, %c0_9], %2 {strides = array<i32>} : memref<1x1x400xf32, #tpu.memory_space<vmem>>, vector<1x1x400xf32>,
      %c0_10 = arith.constant 0 : index
      %c0_11 = arith.constant 0 : index
      %c0_12 = arith.constant 0 : index
      %15 = vector.load %arg4[%c0_10, %c0_11, %c0_12] : memref<1x1x400xf32, #tpu.memory_space<vmem>>, vector<1x1x400xf32>
      tpu.vector_store %arg4[%c0_10, %c0_11, %c0_12], %5 {strides = array<i32>} : memref<1x1x400xf32, #tpu.memory_space<vmem>>, vector<1x1x400xf32>,
      %c0_13 = arith.constant 0 : index
      %c0_14 = arith.constant 0 : index
      %c0_15 = arith.constant 0 : index
      %16 = vector.load %arg5[%c0_13, %c0_14, %c0_15] : memref<1x1x400xf32, #tpu.memory_space<vmem>>, vector<1x1x400xf32>
      tpu.vector_store %arg5[%c0_13, %c0_14, %c0_15], %7 {strides = array<i32>} : memref<1x1x400xf32, #tpu.memory_space<vmem>>, vector<1x1x400xf32>,
    } else {
    }
    %c0_i32_5 = arith.constant 0 : i32
    %11 = arith.cmpi sgt, %arg1, %c0_i32_5 : i32
    %12 = arith.extui %11 : i1 to i32
    %c0_i32_6 = arith.constant 0 : i32
    %13 = arith.cmpi ne, %12, %c0_i32_6 : i32
    scf.if %13 {
      %c0_7 = arith.constant 0 : index
      %c0_8 = arith.constant 0 : index
      %c0_9 = arith.constant 0 : index
      %14 = vector.load %arg3[%c0_7, %c0_8, %c0_9] : memref<1x1x400xf32, #tpu.memory_space<vmem>>, vector<1x1x400xf32>
      %15 = arith.addf %14, %2 : vector<1x1x400xf32>
      %c0_10 = arith.constant 0 : index
      %c0_11 = arith.constant 0 : index
      %c0_12 = arith.constant 0 : index
      %16 = vector.load %arg3[%c0_10, %c0_11, %c0_12] : memref<1x1x400xf32, #tpu.memory_space<vmem>>, vector<1x1x400xf32>
      tpu.vector_store %arg3[%c0_10, %c0_11, %c0_12], %15 {strides = array<i32>} : memref<1x1x400xf32, #tpu.memory_space<vmem>>, vector<1x1x400xf32>,
      %c0_13 = arith.constant 0 : index
      %c0_14 = arith.constant 0 : index
      %c0_15 = arith.constant 0 : index
      %17 = vector.load %arg4[%c0_13, %c0_14, %c0_15] : memref<1x1x400xf32, #tpu.memory_space<vmem>>, vector<1x1x400xf32>
      %18 = arith.addf %17, %5 : vector<1x1x400xf32>
      %c0_16 = arith.constant 0 : index
      %c0_17 = arith.constant 0 : index
      %c0_18 = arith.constant 0 : index
      %19 = vector.load %arg4[%c0_16, %c0_17, %c0_18] : memref<1x1x400xf32, #tpu.memory_space<vmem>>, vector<1x1x400xf32>
      tpu.vector_store %arg4[%c0_16, %c0_17, %c0_18], %18 {strides = array<i32>} : memref<1x1x400xf32, #tpu.memory_space<vmem>>, vector<1x1x400xf32>,
      %c0_19 = arith.constant 0 : index
      %c0_20 = arith.constant 0 : index
      %c0_21 = arith.constant 0 : index
      %20 = vector.load %arg5[%c0_19, %c0_20, %c0_21] : memref<1x1x400xf32, #tpu.memory_space<vmem>>, vector<1x1x400xf32>
      %21 = arith.maximumf %20, %7 : vector<1x1x400xf32>
      %c0_22 = arith.constant 0 : index
      %c0_23 = arith.constant 0 : index
      %c0_24 = arith.constant 0 : index
      %22 = vector.load %arg5[%c0_22, %c0_23, %c0_24] : memref<1x1x400xf32, #tpu.memory_space<vmem>>, vector<1x1x400xf32>
      tpu.vector_store %arg5[%c0_22, %c0_23, %c0_24], %21 {strides = array<i32>} : memref<1x1x400xf32, #tpu.memory_space<vmem>>, vector<1x1x400xf32>,
    } else {
    }
    return
  }
  func.func @transform_0(%arg0: i32, %arg1: i32) -> (i32, i32, i32) {
    %c0_i32 = arith.constant 0 : i32
    %c0_i32_0 = arith.constant 0 : i32
    return %arg0, %arg1, %c0_i32 : i32, i32, i32
  }
  func.func @transform_1(%arg0: i32, %arg1: i32) -> (i32, i32, i32) {
    %c0_i32 = arith.constant 0 : i32
    %c0_i32_0 = arith.constant 0 : i32
    %c0_i32_1 = arith.constant 0 : i32
    return %arg0, %c0_i32, %c0_i32_0 : i32, i32, i32
  }
  func.func @transform_2(%arg0: i32, %arg1: i32) -> (i32, i32, i32) {
    %c0_i32 = arith.constant 0 : i32
    %c0_i32_0 = arith.constant 0 : i32
    %c0_i32_1 = arith.constant 0 : i32
    return %arg0, %c0_i32, %c0_i32_0 : i32, i32, i32
  }
  func.func @transform_3(%arg0: i32, %arg1: i32) -> (i32, i32, i32) {
    %c0_i32 = arith.constant 0 : i32
    %c0_i32_0 = arith.constant 0 : i32
    %c0_i32_1 = arith.constant 0 : i32
    return %arg0, %c0_i32, %c0_i32_0 : i32, i32, i32
  }
}

</mosaic_0001>

<bundles_post_ra>
// kernel: tpu_custom_call.1
= control target key start
LH: loop header
LB: loop body
LE: loop exit
PB: predicated region body
PF: predicated region fallthrough
CT: control target
= control target key end

     0   :  { %9 = vsyncpa [#allocation3], 0  ;;  %s1318_s0 = inlined_call_operand.hbm [shape: f32[2,4,400], index: 0, kind: input, shape index: {}]   ;;  %s1319_s1 = inlined_call_operand.hbm [shape: f32[2,1,400], index: 1, kind: output, shape index: {0}]   ;;  %s1320_s2 = inlined_call_operand.hbm [shape: f32[2,1,400], index: 2, kind: output, shape index: {1}]   ;;  %s1321_s3 = inlined_call_operand.hbm [shape: f32[2,1,400], index: 3, kind: output, shape index: {2}]  }
   0x1   :  { %11 = vsyncpa [#allocation3 + $0x1], 0 }
   0x2   :  { %12 = vsyncpa [#allocation4], 0 }
   0x3   :  { %14 = vsyncpa [#allocation4 + $0x1], 0 }
   0x4   :  { %15 = vsyncpa [#allocation7], 0 }
   0x5   :  { %17 = vsyncpa [#allocation7 + $0x1], 0  ;;  %s1019_s12 = smov 0   ;;  %s1021_s13 = smov 0  }
   0x6   :  { %s1023_s14 = smov 0   ;;  %s1025_s15 = smov 0  }
   0x7   :  { %s1027_s16 = smov 0   ;;  %s1029_s17 = smov 0  }
   0x8 LB: > { %s1050_s18 = sadd.s32 4294967295, %s992_s17   ;;  %s721_s19 = sadd.s32 4294967294, %s992_s17   ;;  %s992_s17 = sphi %s1029_s17, %s23_s17   ;;  %s988_s16 = sphi %s1027_s16, %s1339_s16   ;;  %s984_s15 = sphi %s1025_s15, %s1338_s15   ;;  %s980_s14 = sphi %s1023_s14, %s1337_s14   ;;  %s976_s13 = sphi %s1021_s13, %s1336_s13   ;;  %s972_s12 = sphi %s1019_s12, %s1335_s12  }
   0x9   : > { %s35_s20 = sadd.s32 1, %s988_s16  ;;  %s44_s21 = sadd.s32 1, %s980_s14 }
   0xa   : > { %p37_p0 = scmp.ge.s32.totalorder %s35_s20, 2  ;;  %p51_p1 = scmp.ne.s32.totalorder %s980_s14, %s976_s13 }
   0xb   : > { %p52_p2 = scmp.eq.s32.totalorder %s992_s17, 0  ;;  %p57_p3 = scmp.ne.s32.totalorder %s976_s13, %s972_s12 }
   0xc   : > { %s1341_s20 = smov (%p37_p0, %s35_s20), 0  ;;  %p58_p5 = scmp.eq.s32.totalorder %s1050_s18, 0 }
   0xd   : > { %p1062_p4 = por %p52_p2, %p51_p1  ;;  %s39_s23 = ssub.s32 %s988_s16, %s1341_s20 }
   0xe   : > { %p81_p6 = scmp.eq.s32.totalorder %s1050_s18, 1  ;;  %p42_p7 = scmp.eq.s32.totalorder %s39_s23, 0 }
   0xf   : > { %p1070_p8 = por %p58_p5, %p57_p3  ;;  %p87_p10 = scmp.eq.s32.totalorder %s721_s19, 1 }
  0x10   : > { %p1074_p9 = por %p81_p6, %p51_p1  ;;  %p769_p13 = scmp.lt.s32.totalorder %s992_s17, 2 }
  0x11   : > { %s1081_s26 = scalar_select %p42_p7, %s980_s14, %s44_s21  }
  0x12   : > { %s1325_s25 = scalar_select %p1074_p9, 1, 0 }
  0x13   : > { %p1083_p11 = por %p87_p10, %p57_p3  ;;  %s159_s28 = sand.u32 1, %s980_s14  }
  0x14   : > { %s724_s29 = sshll.u32 %s159_s28, 4  ;;  %s743_s30 = sshll.u32 %s988_s16, 8 }
  0x15   : > { %s1326_s27 = scalar_select %p1083_p11, 1, 0 }
  0x16   : > { %s1094_s6 = scalar_lea.hbm %s1318_s0, %s743_s30  ;;  %s163_s7 = scalar_lea.vmem [#allocation2], %s724_s29 }
  0x17   : > { %s173_s8 = sshll.u32 %s163_s7, 4  ;;  %p1100_p0 = pnand %p769_p13, %p1062_p4  ;;  %s1096_s8 = int_to_ptr.vmem [resolvable:$true] %s173_s8 }
  0x18   : > { %s160_s10 = scalar_lea.sflag [#allocation3], %s159_s28  ;;  %s820_s11 = scalar_lea.hbm %s1094_s6, 256 }
  0x19   : > { %p821_p3 = scmp.ne.s32.totalorder %s1094_s6, %s820_s11  ;;  %p822_p5 = pneg %p1100_p0 }
  0x1a   : > { %s825_s22 = scalar_lea.hbm %s1318_s0, 512  ;;  %p826_p4 = scmp.lt.u32.totalorder %s1094_s6, %s1318_s0 }
  0x1b   : > { %p823_p6 = pnand %p822_p5, %p821_p3  ;;  %p827_p10 = scmp.lt.u32.totalorder %s825_s22, %s820_s11 }
  0x1c   : > { %p829_p12 = scmp.lt.u32.totalorder %s820_s11, %s1094_s6 }
  0x1d   : > { %p824_p7 = pneg %p823_p6  ;;  %p828_p13 = por %p827_p10, %p826_p4 }
  0x1f   : > { %p830_p1 = por %p829_p12, %p828_p13 }
  0x21   : > { %p831_p2 = pnand %p830_p1, %p824_p7 }
  0x23   : > { %834 = shalt.err (!%p831_p2)
}
  0x24   : > { %s835_s28 = scalar_lea.vmem %s1096_s8, 256  ;;  %s994_s4 = smov [#allocation2]  }
  0x25   : > { %p836_p3 = scmp.ne.s32.totalorder %s1096_s8, %s835_s28  ;;  %s840_s5 = sshll.u32 %s994_s4, 4  ;;  %s841_s5 = int_to_ptr.vmem [resolvable:$false] %s840_s5 }
  0x26   : > { %s842_s7 = scalar_lea.vmem %s841_s5, 512  ;;  %p843_p9 = scmp.lt.s32.totalorder %s1096_s8, %s841_s5 }
  0x27   : > { %p838_p6 = pnand %p836_p3, %p822_p5  ;;  %p844_p4 = scmp.lt.s32.totalorder %s842_s7, %s835_s28 }
  0x29   : > { %p839_p11 = pneg %p838_p6  ;;  %p845_p10 = por %p844_p4, %p843_p9 }
  0x2b   : > { %p846_p12 = pnand %p845_p10, %p839_p11 }
  0x2d   : > { %849 = shalt.err (!%p846_p12)
}
  0x2e   : > { %758 = dma.hbm_to_vmem [thread:$0]  (!%p1100_p0), %s1094_s6, 256, %s1096_s8, %s160_s10  }
  0x2f   : > { %p1328_p1 = scmp.lt.s32.totalorder %s992_s17, 3  ;;  %p1329_p2 = scmp.ge.s32.totalorder %s992_s17, 1 }
  0x31   : > { %p179_p5 = pnand %p1329_p2, %p1328_p1 }
  0x32   : > { %s1136_s11 = sand.u32 (!%p179_p5), 1, %s976_s13  }
  0x33   : > { %182 = sbr.rel (%p179_p5) target bundleno = 155 (0x9b), region = 24  ;;  %s728_s21 = sshll.u32 (!%p179_p5), %s1136_s11, 4 }
  0x34   : > { %s185_s23 = scalar_lea.sflag (!%p179_p5), [#allocation3], %s1136_s11  ;;  %s188_s22 = scalar_lea.vmem (!%p179_p5), [#allocation2], %s728_s21 }
  0x3a   : > { %959 = dma.done.wait (%p1070_p8), %s185_s23, 256  }
  0x3b   : > { %961 = vsyncadd (%p1070_p8), %s185_s23, 4294967040  ;;  %v336_v0 = vlaneseq  ;;  %v995_v1 = vmov 1966171168   ;;  %vm229_vm0 = vcmask 1043456   ;;  %v221_v5 = vld [vmem:[%s188_s22] sm:$0xff]  ;;  %v222_v6 = vld [vmem:[%s188_s22 + $0x8] sm:$0xff] }
  0x3c   : > { %v334_v2 = vunpack.c.l.s4 %v995_v1  ;;  %vm251_vm1 = vcmask 125952   ;;  %v259_v8 = vand.u32 2147483647, %v221_v5  ;;  %v260_v9 = vand.u32 2147483647, %v222_v6  ;;  %s1165_s24 = sshll.u32 %s1136_s11, 2 }
  0x3d   : > { %v337_v4 = vshrl.u32 %v336_v0, 7  ;;  %v225_v10 = vcombine.high %v221_v5, %v221_v5  ;;  %v1147_v11 = vcombine.high %v222_v6, %v222_v6  ;;  %v230_v12 = vsel %vm229_vm0, %v221_v5, 0.0  ;;  %s213_s6 = scalar_lea.vmem [#allocation6], %s1165_s24  ;;  %s530_s9 = sand.u32 1, %s1050_s18  }
  0x3e   : > { %v335_v3 = vunpack.c.0.s8 %v334_v2  ;;  %v244_v13 = vsel %vm229_vm0, %v222_v6, 0.0  ;;  %v1152_v14 = vsel %vm229_vm0, %v221_v5, -inf  ;;  %v1155_v15 = vsel %vm229_vm0, %v222_v6, -inf  ;;  %s564_s8 = sshll.u32 %s213_s6, 4  ;;  %s1180_s10 = sshll.u32 %s984_s15, 6  ;;  %s1190_s8 = int_to_ptr.vmem [resolvable:$true] %s564_s8 }
  0x3f   : > { %v263_v16 = vcombine.high %v259_v8, %v259_v8  ;;  %v264_v17 = vcombine.high %v260_v9, %v260_v9  ;;  %v267_v18 = vsel %vm229_vm0, %v259_v8, 0.0  ;;  %v281_v19 = vsel %vm229_vm0, %v260_v9, 0.0  ;;  %s206_s29 = scalar_lea.vmem [#allocation5], %s1165_s24  ;;  %s1198_s28 = scalar_lea.hbm %s1320_s2, %s1180_s10 }
  0x40   : > { %v1145_v7 = vsub.s32 %v335_v3, %v337_v4  ;;  %v268_v20 = vrot.slane %v267_v18, 4  ;;  %v282_v21 = vrot.slane %v281_v19, 4  ;;  %v231_v22 = vrot.slane %v230_v12, 4  ;;  %s550_s30 = sshll.u32 %s206_s29, 4  ;;  %s1210_s7 = scalar_lea.hbm %s1319_s1, %s1180_s10  ;;  %s1200_s30 = int_to_ptr.vmem [resolvable:$true] %s550_s30 }
  0x41   : > { %v237_v23 = vsel %vm229_vm0, %v225_v10, 0.0  ;;  %v274_v24 = vsel %vm229_vm0, %v263_v16, 0.0  ;;  %v288_v25 = vsel %vm251_vm1, %v264_v17, 0.0  ;;  %v245_v27 = vrot.slane %v244_v13, 4  ;;  %s1213_s21 = scalar_lea.sflag [#allocation7], %s530_s9  ;;  %s850_s23 = scalar_lea.vmem %s1190_s8, 64 }
  0x42   : > { %v238_v26 = vrot.slane %v237_v23, 4  ;;  %v269_v28 = vadd.f32 %v268_v20, %v267_v18  ;;  %v275_v29 = vrot.slane %v274_v24, 4  ;;  %v283_v30 = vadd.f32 %v282_v21, %v281_v19  ;;  %p851_p8 = scmp.ne.s32.totalorder %s1190_s8, %s850_s23  ;;  %p1332_p9 = scmp.ne.s32.totalorder %s1325_s25, 0 }
  0x43   : > { %v289_v31 = vrot.slane %v288_v25, 4  ;;  %v232_v32 = vadd.f32 %v231_v22, %v230_v12  ;;  %v246_v34 = vadd.f32 %v245_v27, %v244_v13  ;;  %v252_v35 = vsel %vm251_vm1, %v1147_v11, 0.0  ;;  %s996_s22 = smov [#allocation6]  }
  0x44   : > { %v239_v33 = vadd.f32 %v238_v26, %v237_v23  ;;  %v270_v36 = vrot.slane %v269_v28, 2  ;;  %v276_v37 = vadd.f32 %v275_v29, %v274_v24  ;;  %v284_v38 = vrot.slane %v283_v30, 2  ;;  %p852_p11 = pnand %p851_p8, %p1332_p9 }
  0x45   : > { %v290_v39 = vadd.f32 %v289_v31, %v288_v25  ;;  %v233_v40 = vrot.slane %v232_v32, 2  ;;  %v247_v42 = vrot.slane %v246_v34, 2  ;;  %v253_v43 = vrot.slane %v252_v35, 4 }
  0x46   : > { %v240_v41 = vrot.slane %v239_v33, 2  ;;  %v271_v44 = vadd.f32 %v270_v36, %v269_v28  ;;  %v277_v45 = vrot.slane %v276_v37, 2  ;;  %v285_v46 = vadd.f32 %v284_v38, %v283_v30  ;;  %p853_p0 = pneg %p852_p11 }
  0x47   : > { %v291_v47 = vrot.slane %v290_v39, 2  ;;  %v234_v48 = vadd.f32 %v233_v40, %v232_v32  ;;  %v248_v50 = vadd.f32 %v247_v42, %v246_v34  ;;  %v254_v51 = vadd.f32 %v253_v43, %v252_v35 }
  0x48   : > { %v241_v49 = vadd.f32 %v240_v41, %v239_v33  ;;  %v272_v52 = vrot.slane %v271_v44, 1  ;;  %v278_v53 = vadd.f32 %v277_v45, %v276_v37  ;;  %v286_v54 = vrot.slane %v285_v46, 1 }
  0x49   : > { %v292_v55 = vadd.f32 %v291_v47, %v290_v39  ;;  %v235_v56 = vrot.slane %v234_v48, 1  ;;  %v249_v58 = vrot.slane %v248_v50, 1  ;;  %v255_v59 = vrot.slane %v254_v51, 2 }
  0x4a   : > { %v242_v57 = vrot.slane %v241_v49, 1  ;;  %v273_v60 = vadd.f32 %v272_v52, %v271_v44  ;;  %v279_v61 = vrot.slane %v278_v53, 1  ;;  %v287_v62 = vadd.f32 %v286_v54, %v285_v46 }
  0x4b   : > { %v293_v63 = vrot.slane %v292_v55, 1  ;;  %v236_v1 = vadd.f32 %v235_v56, %v234_v48  ;;  %v250_v3 = vadd.f32 %v249_v58, %v248_v50  ;;  %v256_v4 = vadd.f32 %v255_v59, %v254_v51 }
  0x4c   : > { %v243_v2 = vadd.f32 %v242_v57, %v241_v49  ;;  %v280_v5 = vadd.f32 %v279_v61, %v278_v53  ;;  %v296_v8 = vrot.slane %v1152_v14, 4  ;;  %v302_v9 = vsel %vm229_vm0, %v225_v10, -inf }
  0x4d   : > { %v294_v6 = vadd.f32 %v293_v63, %v292_v55  ;;  %v257_v12 = vrot.slane %v256_v4, 1  ;;  %v303_v16 = vrot.slane %v302_v9, 4  ;;  %v310_v17 = vrot.slane %v1155_v15, 4 }
  0x4e   : > { %v331_v13 = vcombine.low %v236_v1, %v243_v2  ;;  %v365_v18 = vcombine.low %v273_v60, %v280_v5  ;;  %v297_v20 = vmax.f32 %v1152_v14, %v296_v8  ;;  %v316_v21 = vsel %vm251_vm1, %v1147_v11, -inf }
  0x4f   : > { %v366_v19 = vcombine.low %v287_v62, %v294_v6  ;;  %v258_v22 = vadd.f32 %v257_v12, %v256_v4  ;;  %v304_v23 = vmax.f32 %v302_v9, %v303_v16  ;;  %v311_v10 = vmax.f32 %v1155_v15, %v310_v17 }
  0x50   : > { %v373_v24 = vrot.slane %v365_v18, %v1145_v7  ;;  %v298_v26 = vrot.slane %v297_v20, 2  ;;  %v317_v27 = vrot.slane %v316_v21, 4  ;;  %v339_v14 = vrot.slane %v331_v13, %v1145_v7 }
  0x51   : > { %v380_v25 = vrot.slane %v366_v19, %v1145_v7  ;;  %v332_v28 = vcombine.low %v250_v3, %v258_v22  ;;  %v305_v29 = vrot.slane %v304_v23, 2  ;;  %v312_v30 = vrot.slane %v311_v10, 2 }
  0x52   : > { %v299_v15 = vmax.f32 %v297_v20, %v298_v26  ;;  %v318_v31 = vmax.f32 %v316_v21, %v317_v27  ;;  %vm1186_vm2 = vcmp.lt.s32.totalorder %v336_v0, 400 }
  0x53   : > { %v381_v11 = vcombine.low %v373_v24, %v380_v25  ;;  %v346_v33 = vrot.slane %v332_v28, %v1145_v7  ;;  %v306_v34 = vmax.f32 %v304_v23, %v305_v29  ;;  %v313_v35 = vmax.f32 %v311_v10, %v312_v30 }
  0x54   : > { %v300_v37 = vrot.slane %v299_v15, 1  ;;  %v319_v38 = vrot.slane %v318_v31, 2 }
  0x55   : > { %v388_v36 = vrot.slane %v381_v11, %v1145_v7  ;;  %v347_v0 = vcombine.low %v339_v14, %v346_v33  ;;  %v307_v39 = vrot.slane %v306_v34, 1  ;;  %v314_v40 = vrot.slane %v313_v35, 1 }
  0x56   : > { %v1204_v41 = vmax.f32 %v299_v15, %v300_v37  ;;  %v320_v42 = vmax.f32 %v318_v31, %v319_v38 }
  0x57   : > { %390 = vst.msk [vmem:[%s213_s6] sm:$0xf] %vm1186_vm2, %v388_v36  ;;  %v354_v43 = vrot.slane %v347_v0, %v1145_v7  ;;  %v308_v44 = vmax.f32 %v306_v34, %v307_v39  ;;  %s854_s6 = sshll.u32 %s996_s22, 4  ;;  %s855_s6 = int_to_ptr.vmem [resolvable:$false] %s854_s6 }
  0x58   : > { %s856_s15 = scalar_lea.vmem %s855_s6, 128  ;;  %p857_p7 = scmp.lt.s32.totalorder %s1190_s8, %s855_s6 }
  0x59   : > { %p858_p13 = scmp.lt.s32.totalorder %s856_s15, %s850_s23 }
  0x5b   : > { %p859_p3 = por %p858_p13, %p857_p7 }
  0x5d   : > { %p860_p6 = pnand %p859_p3, %p853_p0 }
  0x5f   : > { %863 = shalt.err (!%p860_p6)
}
  0x60   : > { %s864_s9 = scalar_lea.hbm %s1198_s28, 64  ;;  %s868_s5 = scalar_lea.hbm %s1320_s2, 128 }
  0x61   : > { %p865_p4 = scmp.ne.s32.totalorder %s1198_s28, %s864_s9  ;;  %p869_p1 = scmp.lt.u32.totalorder %s1198_s28, %s1320_s2 }
  0x62   : > { %p870_p2 = scmp.lt.u32.totalorder %s868_s5, %s864_s9  ;;  %p872_p8 = scmp.lt.u32.totalorder %s864_s9, %s1198_s28 }
  0x63   : > { %p866_p10 = pnand %p865_p4, %p1332_p9 }
  0x64   : > { %p871_p5 = por %p870_p2, %p869_p1 }
  0x65   : > { %p867_p12 = pneg %p866_p10 }
  0x66   : > { %p873_p11 = por %p872_p8, %p871_p5 }
  0x68   : > { %p874_p0 = pnand %p873_p11, %p867_p12 }
  0x6a   : > { %877 = shalt.err (!%p874_p0)
}
  0x6b   : > { %750 = dma.vmem_to_hbm [thread:$0]  (%p1332_p9), %s1190_s8, 64, %s1198_s28, %s1213_s21   ;;  %v315_v45 = vmax.f32 %v313_v35, %v314_v40  ;;  %v321_v46 = vrot.slane %v320_v42, 1  ;;  %360 = vst.msk [vmem:[%s206_s29] sm:$0xf] %vm1186_vm2, %v354_v43  ;;  %v395_v47 = vcombine.low %v1204_v41, %v308_v44 }
  0x6c   : > { %s526_s23 = scalar_lea.sflag [#allocation4], %s1136_s11  ;;  %s878_s15 = scalar_lea.vmem %s1200_s30, 64 }
  0x6d   : > { %v322_v48 = vmax.f32 %v320_v42, %v321_v46  ;;  %p879_p7 = scmp.ne.s32.totalorder %s1200_s30, %s878_s15  ;;  %s997_s9 = smov [#allocation5]  }
  0x6e   : > { %s882_s18 = sshll.u32 %s997_s9, 4  ;;  %s883_s18 = int_to_ptr.vmem [resolvable:$false] %s882_s18 }
  0x6f   : > { %p880_p13 = pnand %p879_p7, %p1332_p9  ;;  %s884_s4 = scalar_lea.vmem %s883_s18, 128 }
  0x70   : > { %p885_p6 = scmp.lt.s32.totalorder %s1200_s30, %s883_s18  ;;  %p886_p4 = scmp.lt.s32.totalorder %s884_s4, %s878_s15 }
  0x71   : > { %p881_p3 = pneg %p880_p13 }
  0x72   : > { %p887_p10 = por %p886_p4, %p885_p6 }
  0x74   : > { %p888_p12 = pnand %p887_p10, %p881_p3 }
  0x76   : > { %891 = shalt.err (!%p888_p12)
}
  0x77   : > { %s892_s11 = scalar_lea.hbm %s1210_s7, 64  ;;  %s896_s28 = scalar_lea.hbm %s1319_s1, 128 }
  0x78   : > { %p893_p1 = scmp.ne.s32.totalorder %s1210_s7, %s892_s11  ;;  %p897_p8 = scmp.lt.u32.totalorder %s1210_s7, %s1319_s1 }
  0x79   : > { %p898_p11 = scmp.lt.u32.totalorder %s896_s28, %s892_s11  ;;  %p900_p7 = scmp.lt.u32.totalorder %s892_s11, %s1210_s7 }
  0x7a   : > { %p894_p2 = pnand %p893_p1, %p1332_p9 }
  0x7b   : > { %p899_p0 = por %p898_p11, %p897_p8 }
  0x7c   : > { %p895_p5 = pneg %p894_p2 }
  0x7d   : > { %p901_p13 = por %p900_p7, %p899_p0 }
  0x7f   : > { %p902_p3 = pnand %p901_p13, %p895_p5 }
  0x81   : > { %905 = shalt.err (!%p902_p3)
}
  0x82   : > { %749 = dma.vmem_to_hbm [thread:$0]  (%p1332_p9), %s1200_s30, 64, %s1210_s7, %s526_s23   ;;  %v396_v49 = vcombine.low %v315_v45, %v322_v48  ;;  %v403_v50 = vrot.slane %v395_v47, %v1145_v7 }
  0x83   : > { %s220_s6 = scalar_lea.vmem [#allocation8], %s1165_s24  ;;  %s576_s4 = scalar_lea.hbm %s1321_s3, %s1180_s10 }
  0x84   : > { %v410_v51 = vrot.slane %v396_v49, %v1145_v7  ;;  %s578_s15 = sshll.u32 %s220_s6, 4  ;;  %s998_s24 = smov [#allocation8]   ;;  %s1268_s15 = int_to_ptr.vmem [resolvable:$true] %s578_s15 }
  0x85   : > { %s906_s30 = scalar_lea.vmem %s1268_s15, 64  ;;  %s910_s7 = sshll.u32 %s998_s24, 4  ;;  %s911_s7 = int_to_ptr.vmem [resolvable:$false] %s910_s7 }
  0x86   : > { %v411_v52 = vcombine.low %v403_v50, %v410_v51  ;;  %p907_p6 = scmp.ne.s32.totalorder %s1268_s15, %s906_s30  ;;  %s912_s23 = scalar_lea.vmem %s911_s7, 128 }
  0x87   : > { %p913_p12 = scmp.lt.s32.totalorder %s1268_s15, %s911_s7  ;;  %p914_p1 = scmp.lt.s32.totalorder %s912_s23, %s906_s30 }
  0x88   : > { %v418_v53 = vrot.slane %v411_v52, %v1145_v7  ;;  %p908_p4 = pnand %p907_p6, %p1332_p9 }
  0x89   : > { %p915_p2 = por %p914_p1, %p913_p12 }
  0x8a   : > { %420 = vst.msk [vmem:[%s220_s6] sm:$0xf] %vm1186_vm2, %v418_v53  ;;  %p909_p10 = pneg %p908_p4 }
  0x8c   : > { %p916_p5 = pnand %p915_p2, %p909_p10 }
  0x8e   : > { %919 = shalt.err (!%p916_p5)
}
  0x8f   : > { %s920_s11 = scalar_lea.hbm %s576_s4, 64  ;;  %s924_s29 = scalar_lea.hbm %s1321_s3, 128 }
  0x90   : > { %p921_p8 = scmp.ne.s32.totalorder %s576_s4, %s920_s11  ;;  %p925_p7 = scmp.lt.u32.totalorder %s576_s4, %s1321_s3 }
  0x91   : > { %p926_p13 = scmp.lt.u32.totalorder %s924_s29, %s920_s11  ;;  %p928_p6 = scmp.lt.u32.totalorder %s920_s11, %s576_s4 }
  0x92   : > { %p922_p11 = pnand %p921_p8, %p1332_p9 }
  0x93   : > { %p927_p3 = por %p926_p13, %p925_p7 }
  0x94   : > { %p923_p0 = pneg %p922_p11 }
  0x95   : > { %p929_p4 = por %p928_p6, %p927_p3 }
  0x97   : > { %p930_p10 = pnand %p929_p4, %p923_p0 }
  0x99   : > { %933 = shalt.err (!%p930_p10)
}
  0x9a   : > { %751 = dma.vmem_to_hbm [thread:$0]  (%p1332_p9), %s1268_s15, 64, %s576_s4, %s1213_s21  }
  0x9b PF: > { %s590_s22 = sand.u32 1, %s972_s12   ;;  %p1333_p12 = scmp.ne.s32.totalorder %s1326_s27, 0 }
  0x9c   : > { %p1334_p1 = scmp.ge.s32.totalorder %s992_s17, 2  ;;  %s591_s6 = scalar_lea.sflag [#allocation4], %s590_s22 }
  0x9e   : > { %p760_p2 = pnand %p1334_p1, %p1333_p12 }
  0xa0   : > { %963 = dma.done.wait (!%p760_p2), %s591_s6, 64  }
  0xa1   : > { %965 = vsyncadd (!%p760_p2), %s591_s6, 4294967232  ;;  %s599_s9 = sand.u32 1, %s721_s19  }
  0xa2   : > { %s600_s18 = scalar_lea.sflag [#allocation7], %s599_s9 }
  0xa3   : > { %967 = dma.done.wait (!%p760_p2), %s600_s18, 128  }
  0xa4   : > { %969 = vsyncadd (!%p760_p2), %s600_s18, 4294967168  ;;  %s23_s17 = sadd.s32 1, %s992_s17   ;;  %s1335_s12 = smov %s976_s13 }
  0xa5   : > { %p20_p9 = scmp.ge.s32.totalorder %s23_s17, 4   ;;  %s1336_s13 = smov %s980_s14 }
  0xa6   : > { %s1337_s14 = smov %s1081_s26  ;;  %s1338_s15 = smov %s988_s16 }
  0xa7   : > { %s1339_s16 = smov %s1341_s20  ;;  %22 = sbr.rel (!%p20_p9) target bundleno = 8 (0x8), region = 109 }
  0xae   :  { %614 = vsyncpa [#allocation3], 1 }
  0xaf   :  { %616 = vsyncpa [#allocation3 + $0x1], 1 }
  0xb0   :  { %617 = vsyncpa [#allocation4], 1 }
  0xb1   :  { %619 = vsyncpa [#allocation4 + $0x1], 1 }
  0xb2   :  { %620 = vsyncpa [#allocation7], 1 }
  0xb3   :  { %622 = vsyncpa [#allocation7 + $0x1], 1 }

</bundles_post_ra>
